<compile_context>
chip_gen: v7x
topology: tpu7x:2x2x1
jax: 0.10.0
libtpu: 0.0.40
codegen_flags: <defaults>
</compile_context>

<pallas_src>
import jax
import jax.numpy as jnp
from jax.experimental import pallas as pl
from jax.experimental.pallas import tpu as pltpu

EPS = 1e-5


def _ceil_div(a, b):
    return -(-a // b)


def _round_up(a, b):
    return _ceil_div(a, b) * b


def _sublane_granularity(dtype):
    """Minimum dense sublane count for the dtype (8 f32, 16 bf16, 32 int8/fp8)."""
    itemsize = jnp.dtype(dtype).itemsize
    if itemsize >= 4:
        return 8
    if itemsize == 2:
        return 16
    return 32


def _pick_row_tile(rows, hw, dtype, target_block_bytes=4 * 1024 * 1024,
                   min_grid_steps=4):
    """Row tile R for a (rows, hw) view.

    R is a multiple of the dtype's sublane granularity (or the full extent
    when rows is smaller than that), targets ~target_block_bytes per input
    block, and -- when rows permits -- is shrunk so the grid has at least
    `min_grid_steps` steps (keeps both v7x TensorCores busy).  The grid uses
    cdiv, so R does not need to divide rows (Pallas masks the ragged block).
    """
    gran = _sublane_granularity(dtype)
    if rows <= gran:
        return rows  # full extent: always a legal block shape

    elem = jnp.dtype(dtype).itemsize
    row_bytes = max(1, hw * elem)
    max_rows_budget = max(1, target_block_bytes // row_bytes)

    # Largest sublane multiple within the byte budget (never below gran).
    r = max(gran, (max_rows_budget // gran) * gran)
    # No point in a block taller than the (sublane-padded) array.
    r = min(r, _round_up(rows, gran))

    # Guarantee enough grid steps for megacore sharding, if rows permit.
    if _ceil_div(rows, r) < min_grid_steps:
        want = max(gran, _round_up(_ceil_div(rows, min_grid_steps), gran))
        r = max(gran, min(r, want))
    return r


def _ibn_row_kernel(x_ref, pqm_ref, out_ref):
    """Fused normalize + affine over a (R, HW) row tile.

    Each row is one (n, c) spatial plane.  pqm_ref is (R, 3):
      column 0: gamma_IN (IN rows) or precomputed BN scale (BN rows)
      column 1: beta_IN  (IN rows) or precomputed BN shift (BN rows)
      column 2: 1.0 for IN rows, 0.0 for BN rows
    IN rows use their own per-row mean / centered variance; BN rows reduce to
    a single mul-add with the precomputed per-channel scale/shift.
    """
    x = x_ref[...].astype(jnp.float32)           # (R, HW)
    pqm = pqm_ref[...].astype(jnp.float32)       # (R, 3)
    p = pqm[:, 0:1]
    q = pqm[:, 1:2]
    m = pqm[:, 2:3]

    inv_hw = 1.0 / x.shape[-1]
    mean = jnp.sum(x, axis=-1, keepdims=True) * inv_hw
    centered = x - mean                          # two-pass (centered) variance
    var = jnp.sum(centered * centered, axis=-1, keepdims=True) * inv_hw
    inv_std = jax.lax.rsqrt(var + EPS)           # EUP slot (free-ish)

    a = p * jnp.where(m > 0.0, inv_std, 1.0)     # per-row scale
    b = q - m * mean * a                         # per-row shift
    out_ref[...] = (x * a + b).astype(out_ref.dtype)


def ibn_forward(x_nchw, gamma_in, beta_in, gamma_bn, beta_bn, half):
    """IBN forward. x_nchw: (N, C, H, W). Returns (N, C, H, W)."""
    N, C, H, W = x_nchw.shape
    HW = H * W
    Ci = int(half)
    Cb = C - Ci
    rows = N * C
    f32 = jnp.float32

    # Free, layout-preserving view: one row per (n, c) plane, spatial on lanes.
    x_rows = x_nchw.reshape(rows, HW)

    # BatchNorm half: training-mode batch statistics.  Accumulate in f32 via
    # the reduction itself (dtype= / fused convert+square) so no widened copy
    # of the BN half is materialized -- only Cb scalars are produced.
    if Cb > 0:
        xb = x_nchw.reshape(N, C, HW)[:, Ci:, :]
        cnt = float(N * HW)
        bn_sum = jnp.sum(xb, axis=(0, 2), dtype=f32)
        bn_sumsq = jnp.sum(jnp.square(xb.astype(f32)), axis=(0, 2))
        bn_mean = bn_sum / cnt
        bn_var = jnp.maximum(bn_sumsq / cnt - bn_mean * bn_mean, 0.0)
        bn_scale = gamma_bn.astype(f32) * jax.lax.rsqrt(bn_var + EPS)
        bn_shift = beta_bn.astype(f32) - bn_mean * bn_scale
    else:
        bn_scale = jnp.zeros((0,), f32)
        bn_shift = jnp.zeros((0,), f32)

    g_in = gamma_in.astype(f32) if Ci > 0 else jnp.zeros((0,), f32)
    b_in = beta_in.astype(f32) if Ci > 0 else jnp.zeros((0,), f32)

    # One packed per-row parameter array (rows, 3): a single tiny DMA per step.
    p_c = jnp.concatenate([g_in, bn_scale])                               # (C,)
    q_c = jnp.concatenate([b_in, bn_shift])                               # (C,)
    m_c = jnp.concatenate([jnp.ones((Ci,), f32), jnp.zeros((Cb,), f32)])  # (C,)
    pqm_c = jnp.stack([p_c, q_c, m_c], axis=-1)                           # (C, 3)
    pqm_rows = jnp.tile(pqm_c, (N, 1))                                    # (rows, 3)

    R = _pick_row_tile(rows, HW, x_nchw.dtype)
    grid = (_ceil_div(rows, R),)

    row_spec = pl.BlockSpec((R, HW), lambda i: (i, 0))
    par_spec = pl.BlockSpec((R, 3), lambda i: (i, 0))

    # VMEM budget: double-buffered input + output blocks + the tiny param
    # block (lane-padded to 128).  Floor at 32 MiB (safe on v5e/v6e/v7x).
    elem = jnp.dtype(x_nchw.dtype).itemsize
    block_bytes = R * HW * elem
    param_bytes = R * 128 * 4
    needed = 2 * (2 * block_bytes + param_bytes) + (2 << 20)
    vmem_limit = int(min(max(32 << 20, needed), 128 << 20))

    out_rows = pl.pallas_call(
        _ibn_row_kernel,
        out_shape=jax.ShapeDtypeStruct((rows, HW), x_nchw.dtype),
        grid_spec=pltpu.PrefetchScalarGridSpec(
            num_scalar_prefetch=0,
            grid=grid,
            in_specs=[row_spec, par_spec],
            out_specs=row_spec,
        ),
        compiler_params=pltpu.CompilerParams(
            dimension_semantics=("parallel",),   # shard row tiles across TCs
            vmem_limit_bytes=vmem_limit,
        ),
    )(x_rows, pqm_rows)

    return out_rows.reshape(N, C, H, W)


def ibn_reference(x, gamma_in, beta_in, gamma_bn, beta_bn, half):
    """Pure-JAX reference matching the PyTorch forward (training-mode BN)."""
    x1 = x[:, :half]
    x2 = x[:, half:]
    m1 = jnp.mean(x1, axis=(2, 3), keepdims=True)
    v1 = jnp.mean((x1 - m1) ** 2, axis=(2, 3), keepdims=True)
    o1 = (x1 - m1) / jnp.sqrt(v1 + EPS)
    o1 = o1 * gamma_in.reshape(1, -1, 1, 1) + beta_in.reshape(1, -1, 1, 1)
    m2 = jnp.mean(x2, axis=(0, 2, 3), keepdims=True)
    v2 = jnp.mean((x2 - m2) ** 2, axis=(0, 2, 3), keepdims=True)
    o2 = (x2 - m2) / jnp.sqrt(v2 + EPS)
    o2 = o2 * gamma_bn.reshape(1, -1, 1, 1) + beta_bn.reshape(1, -1, 1, 1)
    return jnp.concatenate([o1, o2], axis=1)


if __name__ == "__main__":
    # IBN(planes=4, ratio=0.5) -> half = 2
    planes = 4
    ratio = 0.5
    half = int(planes * ratio)

    key = jax.random.PRNGKey(0)
    kx, kg1, kb1, kg2, kb2 = jax.random.split(key, 5)

    N, C, H, W = 2, planes, 16, 16
    x = jax.random.normal(kx, (N, C, H, W), dtype=jnp.float32)

    # Deterministic (non-trivial) affine parameters.
    gamma_in = 1.0 + 0.1 * jax.random.normal(kg1, (half,), dtype=jnp.float32)
    beta_in = 0.1 * jax.random.normal(kb1, (half,), dtype=jnp.float32)
    gamma_bn = 1.0 + 0.1 * jax.random.normal(kg2, (planes - half,), dtype=jnp.float32)
    beta_bn = 0.1 * jax.random.normal(kb2, (planes - half,), dtype=jnp.float32)

    out = ibn_forward(x, gamma_in, beta_in, gamma_bn, beta_bn, half)
    out = jax.block_until_ready(out)

    ref = ibn_reference(x, gamma_in, beta_in, gamma_bn, beta_bn, half)
    if not bool(jnp.allclose(out, ref, atol=1e-4, rtol=1e-4)):
        raise AssertionError("Pallas IBN output does not match reference")

    print("KERNEL_OK")
</pallas_src>

<mosaic_0001>
module attributes {stable_mosaic.version = 11 : i64} {
  func.func @_ibn_row_kernel(%arg0: i32, %arg1: memref<8x256xf32, #tpu.memory_space<vmem>>, %arg2: memref<8x3xf32, #tpu.memory_space<vmem>>, %arg3: memref<8x256xf32, #tpu.memory_space<vmem>>) attributes {dimension_semantics = [#tpu.dimension_semantics<parallel>], iteration_bounds = array<i64: 1>, scalar_prefetch = 0 : i64, scratch_operands = 0 : i64, tpu.core_type = #tpu.core_type<tc>, window_params = [{transform_indices = @transform_0, window_bounds = array<i64: 8, 256>}, {transform_indices = @transform_1, window_bounds = array<i64: 8, 3>}, {transform_indices = @transform_2, window_bounds = array<i64: 8, 256>}]} {
    %c0 = arith.constant 0 : index
    %c0_0 = arith.constant 0 : index
    %0 = vector.load %arg1[%c0, %c0_0] : memref<8x256xf32, #tpu.memory_space<vmem>>, vector<8x256xf32>
    %c0_1 = arith.constant 0 : index
    %c0_2 = arith.constant 0 : index
    %1 = vector.load %arg2[%c0_1, %c0_2] : memref<8x3xf32, #tpu.memory_space<vmem>>, vector<8x3xf32>
    %2 = vector.extract_strided_slice %1 {offsets = [0, 0], sizes = [8, 1], strides = [1, 1]} : vector<8x3xf32> to vector<8x1xf32>
    %3 = vector.extract_strided_slice %1 {offsets = [0, 1], sizes = [8, 1], strides = [1, 1]} : vector<8x3xf32> to vector<8x1xf32>
    %4 = vector.extract_strided_slice %1 {offsets = [0, 2], sizes = [8, 1], strides = [1, 1]} : vector<8x3xf32> to vector<8x1xf32>
    %cst = arith.constant dense<0.000000e+00> : vector<8xf32>
    %5 = vector.multi_reduction <add>, %0, %cst [1] : vector<8x256xf32> to vector<8xf32>
    %6 = vector.shape_cast %5 : vector<8xf32> to vector<8x1xf32>
    %cst_3 = arith.constant 3.906250e-03 : f32
    %7 = vector.broadcast %cst_3 : f32 to vector<8x1xf32>
    %8 = arith.mulf %6, %7 : vector<8x1xf32>
    %9 = vector.broadcast %8 : vector<8x1xf32> to vector<8x256xf32>
    %10 = arith.subf %0, %9 : vector<8x256xf32>
    %11 = arith.mulf %10, %10 : vector<8x256xf32>
    %cst_4 = arith.constant dense<0.000000e+00> : vector<8xf32>
    %12 = vector.multi_reduction <add>, %11, %cst_4 [1] : vector<8x256xf32> to vector<8xf32>
    %13 = vector.shape_cast %12 : vector<8xf32> to vector<8x1xf32>
    %cst_5 = arith.constant 3.906250e-03 : f32
    %14 = vector.broadcast %cst_5 : f32 to vector<8x1xf32>
    %15 = arith.mulf %13, %14 : vector<8x1xf32>
    %cst_6 = arith.constant 9.99999974E-6 : f32
    %16 = vector.broadcast %cst_6 : f32 to vector<8x1xf32>
    %17 = arith.addf %15, %16 : vector<8x1xf32>
    %18 = math.rsqrt %17 : vector<8x1xf32>
    %cst_7 = arith.constant 0.000000e+00 : f32
    %19 = vector.broadcast %cst_7 : f32 to vector<8x1xf32>
    %20 = arith.cmpf ogt, %4, %19 : vector<8x1xf32>
    %cst_8 = arith.constant 1.000000e+00 : f32
    %21 = vector.broadcast %cst_8 : f32 to vector<8x1xf32>
    %22 = arith.select %20, %18, %21 : vector<8x1xi1>, vector<8x1xf32>
    %23 = arith.mulf %2, %22 : vector<8x1xf32>
    %24 = arith.mulf %4, %8 : vector<8x1xf32>
    %25 = arith.mulf %24, %23 : vector<8x1xf32>
    %26 = arith.subf %3, %25 : vector<8x1xf32>
    %27 = vector.broadcast %23 : vector<8x1xf32> to vector<8x256xf32>
    %28 = arith.mulf %0, %27 : vector<8x256xf32>
    %29 = vector.broadcast %26 : vector<8x1xf32> to vector<8x256xf32>
    %30 = arith.addf %28, %29 : vector<8x256xf32>
    %c0_9 = arith.constant 0 : index
    %c0_10 = arith.constant 0 : index
    %31 = vector.load %arg3[%c0_9, %c0_10] : memref<8x256xf32, #tpu.memory_space<vmem>>, vector<8x256xf32>
    tpu.vector_store %arg3[%c0_9, %c0_10], %30 {strides = array<i32>} : memref<8x256xf32, #tpu.memory_space<vmem>>, vector<8x256xf32>,
    return
  }
  func.func @transform_0(%arg0: i32) -> (i32, i32) {
    %c0_i32 = arith.constant 0 : i32
    %c0_i32_0 = arith.constant 0 : i32
    return %arg0, %c0_i32 : i32, i32
  }
  func.func @transform_1(%arg0: i32) -> (i32, i32) {
    %c0_i32 = arith.constant 0 : i32
    %c0_i32_0 = arith.constant 0 : i32
    return %arg0, %c0_i32 : i32, i32
  }
  func.func @transform_2(%arg0: i32) -> (i32, i32) {
    %c0_i32 = arith.constant 0 : i32
    %c0_i32_0 = arith.constant 0 : i32
    return %arg0, %c0_i32 : i32, i32
  }
}

</mosaic_0001>

<bundles_post_ra>
// kernel: tpu_custom_call.1
= control target key start
LH: loop header
LB: loop body
LE: loop exit
PB: predicated region body
PF: predicated region fallthrough
CT: control target
= control target key end

     0   :  { %7 = vsyncpa [#allocation3], 0  ;;  %s198_s0 = inlined_call_operand.hbm [shape: f32[8,256], index: 0, kind: input, shape index: {}]   ;;  %s199_s1 = inlined_call_operand.vmem [shape: f32[8,3], index: 1, kind: input, shape index: {}]   ;;  %s200_s2 = inlined_call_operand.hbm [shape: f32[8,256], index: 2, kind: output, shape index: {}]  }
   0x1   :  { %8 = vsyncpa [#allocation4], 0  ;;  %s149_s9 = smov [#allocation2]   ;;  %s101_s13 = scalar_lea.hbm %s198_s0, 256 }
   0x2   :  { %s15_s10 = sshll.u32 %s149_s9, 4  ;;  %p102_p0 = scmp.ne.s32.totalorder %s198_s0, %s101_s13  ;;  %s16_s10 = int_to_ptr.vmem [resolvable:$true] %s15_s10 }
   0x3   :  { %p105_p1 = scmp.lt.u32.totalorder %s101_s13, %s198_s0 }
   0x5   :  { %p107_p2 = pnand %p105_p1, %p102_p0 }
   0x7   :  { %110 = shalt.err (!%p107_p2)
}
   0x8   :  { %s111_s18 = scalar_lea.vmem %s16_s10, 256  ;;  %p116_p4 = scmp.lt.s32.totalorder %s16_s10, %s16_s10 }
   0x9   :  { %p112_p3 = scmp.ne.s32.totalorder %s16_s10, %s111_s18  ;;  %p117_p5 = scmp.lt.s32.totalorder %s111_s18, %s111_s18 }
   0xb   :  { %p118_p6 = por %p117_p5, %p116_p4 }
   0xd   :  { %p119_p7 = pnand %p118_p6, %p112_p3 }
   0xf   :  { %122 = shalt.err (!%p119_p7)
}
  0x10   :  { %18 = dma.hbm_to_vmem [thread:$0]  %s198_s0, 256, %s16_s10, [#allocation3]  }
  0x11   :  { %145 = dma.done.wait [#allocation3], 256  }
  0x12   :  { %146 = vsyncadd [#allocation3], 4294967040  ;;  %v24_v0 = vld [vmem:[#allocation2] sm:$0xff]  ;;  %v25_v1 = vld [vmem:[#allocation2 + $0x8] sm:$0xff]  ;;  %v150_v13 = vmov 0   ;;  %s151_s22 = smov 126  }
  0x13   :  { %v27_v2 = vadd.f32 %v25_v1, %v24_v0  ;;  %96 = vset.pattern.permute.xlu1 %v150_v13  ;;  %v26_v14 = vld [vmem:[%s199_s1] sm:$0xff]  ;;  %s152_s23 = smov 2   ;;  %v153_v19 = vmov 1   ;;  %s154_s24 = smov 127  }
  0x14   :  { %vm41_vm0 = vcmp.gt.f32.partialorder %v26_v14, 0.0  ;;  %98 = vset.pattern.permute.xlu0 %v153_v19  ;;  %s155_s1 = smov [#allocation5]  }
  0x15   :  { %28 = vadd.xlane.f32.xlu0 %v27_v2  ;;  %s80_s25 = sshll.u32 %s155_s1, 4  ;;  %s81_s25 = int_to_ptr.vmem [resolvable:$true] %s80_s25 }
  0x16   :  { %s123_s26 = scalar_lea.vmem %s81_s25, 256  ;;  %p128_p9 = scmp.lt.s32.totalorder %s81_s25, %s81_s25 }
  0x17   :  { %p124_p8 = scmp.ne.s32.totalorder %s81_s25, %s123_s26  ;;  %p129_p10 = scmp.lt.s32.totalorder %s123_s26, %s123_s26 }
  0x19   :  { %p130_p11 = por %p129_p10, %p128_p9 }
  0x1b   :  { %p131_p12 = pnand %p130_p11, %p124_p8 }
  0xa2   :  { %v29_v3 = vpop.xlane.xlu0 %28 }
  0xa3   :  { %v30_v4 = vmul.f32 0.00390625, %v29_v3 }
  0xa5   :  { %v31_v5 = vsub.f32 %v24_v0, %v30_v4  ;;  %v32_v6 = vsub.f32 %v25_v1, %v30_v4  ;;  %v48_v20 = vmul.f32 %v30_v4, %v26_v14 }
  0xa7   :  { %v33_v7 = vmul.f32 %v31_v5, %v31_v5  ;;  %v34_v8 = vmul.f32 %v32_v6, %v32_v6 }
  0xa9   :  { %v35_v9 = vadd.f32 %v34_v8, %v33_v7 }
  0xab   :  { %36 = vadd.xlane.f32.xlu0 %v35_v9 }
 0x138   :  { %v37_v10 = vpop.xlane.xlu0 %36 }
 0x139   :  { %v38_v11 = vmul.f32 0.00390625, %v37_v10 }
 0x13b   :  { %v39_v12 = vadd.f32 1e-05, %v38_v11 }
 0x13d   :  { %99 = vrsqrt.f32 %v39_v12 }
 0x147   :  { %v100_v15 = vpop.eup %99 }
 0x148   :  { %v42_v16 = vsel %vm41_vm0, %v100_v15, 1.0 }
 0x149   :  { %44 = vrot.lane.b32.xlu1 %v42_v16, %s151_s22 }
 0x1bb   :  { %v45_v17 = vpop.permute.xlu1 %44 }
 0x1bc   :  { %v47_v18 = vmul.f32 %v45_v17, %v26_v14 }
 0x1be   :  { %50 = vrot.lane.b32.xlu1 %v47_v18, %s152_s23 }
 0x1c2   :  { %60 = vperm.xlu1 %96, %v47_v18  }
 0x1c6   :  { %97 = vset.pattern.permute.xlu1 %v153_v19 }
 0x230   :  { %v51_v21 = vpop.permute.xlu1 %50 }
 0x231   :  { %v53_v22 = vmul.f32 %v51_v21, %v48_v20 }
 0x233   :  { %55 = vrot.lane.b32.xlu0 %v53_v22, %s154_s24 }
 0x241   :  { %v61_v25 = vpop.permute.xlu1 %60 }
 0x242   :  { %v63_v26 = vmul.f32 %v61_v25, %v24_v0  ;;  %v64_v27 = vmul.f32 %v61_v25, %v25_v1 }
 0x2a5   :  { %v56_v23 = vpop.permute.xlu0 %55 }
 0x2a6   :  { %v58_v24 = vsub.f32 %v26_v14, %v56_v23 }
 0x2a8   :  { %67 = vperm.xlu1 %97, %v58_v24  }
 0x327   :  { %v68_v28 = vpop.permute.xlu1 %67 }
 0x328   :  { %v70_v29 = vadd.f32 %v68_v28, %v63_v26  ;;  %v71_v30 = vadd.f32 %v68_v28, %v64_v27 }
 0x32a   :  { %72 = vst [vmem:[#allocation5] sm:$0xff] %v70_v29  ;;  %73 = vst [vmem:[#allocation5 + $0x8] sm:$0xff] %v71_v30 }
 0x32b   :  { %134 = shalt.err (!%p131_p12)
}
 0x32c   :  { %s135_s29 = scalar_lea.hbm %s200_s2, 256 }
 0x32d   :  { %p136_p13 = scmp.ne.s32.totalorder %s200_s2, %s135_s29  ;;  %p139_p0 = scmp.lt.u32.totalorder %s135_s29, %s200_s2 }
 0x32f   :  { %p141_p1 = pnand %p139_p0, %p136_p13 }
 0x331   :  { %144 = shalt.err (!%p141_p1)
}
 0x332   :  { %83 = dma.vmem_to_hbm [thread:$0]  %s81_s25, 256, %s200_s2, [#allocation4]  }
 0x333   :  { %147 = dma.done.wait [#allocation4], 256  }
 0x334   :  { %148 = vsyncadd [#allocation4], 4294967040 }
 0x335   :  { %87 = vsyncpa [#allocation3], 1 }
 0x336   :  { %88 = vsyncpa [#allocation4], 1 }

</bundles_post_ra>
